<compile_context>
chip_gen: v6e
topology: v6e:2x2x1
jax: 0.10.0
libtpu: 0.0.40
codegen_flags: <defaults>
</compile_context>

<pallas_src>
import functools

import jax
import jax.numpy as jnp
from jax.experimental import pallas as pl
from jax.experimental.pallas import tpu as pltpu

LANE = 128         # pad the 2-wide logits to a lane-dense 128-wide block
OUT_DIM = 2
MAX_TILE_M = 1024  # batch rows per grid step (sweepable 512..2048)


def _next_pow2(x):
    return 1 if x <= 1 else 1 << (x - 1).bit_length()


def _tiling(batch):
    """Pick (padded_batch, tile_m).  Power-of-two buckets limit recompiles."""
    b_pad = max(8, _next_pow2(batch))
    if b_pad <= 256:
        tile_m = b_pad                        # small batch: one step is fine
    else:
        tile_m = min(MAX_TILE_M, b_pad // 2)  # >= 2 steps -> both v7x TCs
    return b_pad, tile_m


def _policy_kernel(states_ref,          # VMEM (TILE_M, 1) int32
                   t1_ref,              # VMEM (N+1, H) f32  fused emb@w1+b1 (resident)
                   w2_ref, b2_ref,      # VMEM (H, H), (1, H)
                   w3_ref, b3_ref,      # VMEM (H, 128), (1, 128)  zero-padded
                   out_ref):            # VMEM (TILE_M, 128)
    tile_m = states_ref.shape[0]
    n_rows = t1_ref.shape[0]

    # Row-gather of the fused (emb@w1+b1) table as a one-hot MXU matmul.
    # Each one-hot row has exactly one 1 -> exact row select.
    s_col = states_ref[...]                                            # (TILE_M, 1)
    cols = jax.lax.broadcasted_iota(jnp.int32, (tile_m, n_rows), 1)    # (TILE_M, N+1)
    onehot = (cols == s_col).astype(jnp.float32)
    h = jnp.dot(onehot, t1_ref[...], preferred_element_type=jnp.float32)  # (TILE_M, H)
    h = jnp.maximum(h, 0.0)

    h = jnp.dot(h, w2_ref[...], preferred_element_type=jnp.float32) + b2_ref[...]
    h = jnp.maximum(h, 0.0)
    o = jnp.dot(h, w3_ref[...], preferred_element_type=jnp.float32) + b3_ref[...]

    out_ref[...] = o.astype(out_ref.dtype)                             # (TILE_M, 128)


@functools.partial(jax.jit, static_argnames=("tile_m",))
def _policy_pallas(states_p, t1, w2, b2, w3p, b3p, *, tile_m):
    """states_p: (b_pad,) int32 already padded to a bucket size."""
    b_pad = states_p.shape[0]
    n_rows = t1.shape[0]

    # Clamp (nn.Embedding would error on OOB; a zero one-hot row would be
    # silently wrong) and make the states a 2-D column for the kernel.
    states_2d = jnp.clip(states_p, 0, n_rows - 1).reshape(b_pad, 1)

    grid_spec = pltpu.PrefetchScalarGridSpec(
        num_scalar_prefetch=0,
        grid=(b_pad // tile_m,),
        in_specs=[
            pl.BlockSpec((tile_m, 1), lambda i: (i, 0)),   # per-step states tile
            pl.BlockSpec(t1.shape,    lambda i: (0, 0)),   # resident across all steps
            pl.BlockSpec(w2.shape,    lambda i: (0, 0)),
            pl.BlockSpec(b2.shape,    lambda i: (0, 0)),
            pl.BlockSpec(w3p.shape,   lambda i: (0, 0)),
            pl.BlockSpec(b3p.shape,   lambda i: (0, 0)),
        ],
        out_specs=pl.BlockSpec((tile_m, LANE), lambda i: (i, 0)),
    )

    return pl.pallas_call(
        _policy_kernel,
        out_shape=jax.ShapeDtypeStruct((b_pad, LANE), jnp.float32),
        grid_spec=grid_spec,
        compiler_params=pltpu.CompilerParams(
            dimension_semantics=("parallel",)),   # batch tiles are independent
    )(states_2d, t1, w2, b2, w3p, b3p)


def prepare_params(params):
    """One-time prep: fuse Embedding+Linear1, pad the last Linear to 128 lanes."""
    emb, w1, b1, w2, b2, w3, b3 = params
    hidden = w1.shape[1]
    t1 = (emb.astype(jnp.float32) @ w1.astype(jnp.float32)
          + b1.astype(jnp.float32))                                    # (N+1, H)
    w3p = jnp.zeros((hidden, LANE), jnp.float32).at[:, :w3.shape[1]].set(w3)
    b3p = jnp.zeros((1, LANE), jnp.float32).at[:, :b3.shape[1]].set(b3)
    return (t1, w2.astype(jnp.float32), b2.astype(jnp.float32), w3p, b3p)


def forward_policy_batch(states, prepared):
    """Evaluate the policy for a whole vector of states in one kernel call."""
    t1, w2, b2, w3p, b3p = prepared
    states = jnp.asarray(states, jnp.int32).reshape(-1)
    batch = int(states.shape[0])
    b_pad, tile_m = _tiling(batch)
    if b_pad != batch:
        states = jnp.pad(states, (0, b_pad - batch))   # padded rows -> state 0
    out = _policy_pallas(states, t1, w2, b2, w3p, b3p, tile_m=tile_m)
    return out[:batch, :OUT_DIM]


def forward_policy(s, prepared):
    """Mirror of ForwardPolicy.forward(s): single state -> logits (1, 2)."""
    return forward_policy_batch(jnp.asarray(s, jnp.int32).reshape(1), prepared)


def init_params(N, hidden, key):
    """Deterministic synthetic parameters (shapes match the nn.Module).
    Linear weights stored as (in_features, out_features) so y = x @ W + b."""
    ks = jax.random.split(key, 7)
    scale_h = 1.0 / jnp.sqrt(hidden)
    emb = jax.random.normal(ks[0], (N + 1, hidden), jnp.float32)
    w1 = jax.random.uniform(ks[1], (hidden, hidden), jnp.float32, -scale_h, scale_h)
    b1 = jax.random.uniform(ks[2], (1, hidden), jnp.float32, -scale_h, scale_h)
    w2 = jax.random.uniform(ks[3], (hidden, hidden), jnp.float32, -scale_h, scale_h)
    b2 = jax.random.uniform(ks[4], (1, hidden), jnp.float32, -scale_h, scale_h)
    w3 = jax.random.uniform(ks[5], (hidden, 2), jnp.float32, -scale_h, scale_h)
    b3 = jax.random.uniform(ks[6], (1, 2), jnp.float32, -scale_h, scale_h)
    return (emb, w1, b1, w2, b2, w3, b3)


def _reference_batch(states, params):
    """Plain-JAX reference of the PyTorch forward (sanity check)."""
    emb, w1, b1, w2, b2, w3, b3 = params
    e = emb[states]                                   # (B, H)
    h = jnp.maximum(e @ w1 + b1, 0.0)
    h = jnp.maximum(h @ w2 + b2, 0.0)
    return h @ w3 + b3                                # (B, 2)


if __name__ == "__main__":
    N = 15          # states 0..N -> embedding table has N+1 = 16 rows
    hidden = 64     # matches the module's default hidden size
    key = jax.random.PRNGKey(0)
    params = init_params(N, hidden, key)
    prepared = prepare_params(params)   # hoisted, done once

    # 1) Single-state path (original module semantics: forward(s) -> (1, 2)).
    s = 7
    out1 = jax.block_until_ready(forward_policy(s, prepared))
    ref1 = _reference_batch(jnp.asarray([s], jnp.int32), params)
    assert out1.shape == (1, 2), out1.shape
    assert jnp.allclose(out1, ref1, atol=2e-2, rtol=2e-2), (out1, ref1)

    # 2) Batched path: many states in one pallas_call (padded to 512, 2 tiles).
    states = jax.random.randint(jax.random.PRNGKey(1), (300,), 0, N + 1, jnp.int32)
    out_b = jax.block_until_ready(forward_policy_batch(states, prepared))
    ref_b = _reference_batch(states, params)
    assert out_b.shape == (300, 2), out_b.shape
    assert jnp.allclose(out_b, ref_b, atol=2e-2, rtol=2e-2), "batched mismatch"

    print("KERNEL_OK")
</pallas_src>

<mosaic_0001>
module attributes {stable_mosaic.version = 11 : i64} {
  func.func @_policy_kernel(%arg0: i32, %arg1: memref<8x1xi32, #tpu.memory_space<vmem>>, %arg2: memref<16x64xf32, #tpu.memory_space<vmem>>, %arg3: memref<64x64xf32, #tpu.memory_space<vmem>>, %arg4: memref<1x64xf32, #tpu.memory_space<vmem>>, %arg5: memref<64x128xf32, #tpu.memory_space<vmem>>, %arg6: memref<1x128xf32, #tpu.memory_space<vmem>>, %arg7: memref<8x128xf32, #tpu.memory_space<vmem>>) attributes {dimension_semantics = [#tpu.dimension_semantics<parallel>], iteration_bounds = array<i64: 1>, scalar_prefetch = 0 : i64, scratch_operands = 0 : i64, tpu.core_type = #tpu.core_type<tc>, window_params = [{transform_indices = @transform_0, window_bounds = array<i64: 8, 1>}, {pipeline_mode = #tpu.pipeline_mode<synchronous>, transform_indices = @transform_1, window_bounds = array<i64: 16, 64>}, {pipeline_mode = #tpu.pipeline_mode<synchronous>, transform_indices = @transform_2, window_bounds = array<i64: 64, 64>}, {pipeline_mode = #tpu.pipeline_mode<synchronous>, transform_indices = @transform_3, window_bounds = array<i64: 1, 64>}, {pipeline_mode = #tpu.pipeline_mode<synchronous>, transform_indices = @transform_4, window_bounds = array<i64: 64, 128>}, {pipeline_mode = #tpu.pipeline_mode<synchronous>, transform_indices = @transform_5, window_bounds = array<i64: 1, 128>}, {transform_indices = @transform_6, window_bounds = array<i64: 8, 128>}]} {
    %c0 = arith.constant 0 : index
    %c0_0 = arith.constant 0 : index
    %0 = vector.load %arg1[%c0, %c0_0] : memref<8x1xi32, #tpu.memory_space<vmem>>, vector<8x1xi32>
    %1 = tpu.iota {dimensions = array<i32: 1>} : vector<8x16xi32>
    %2 = vector.broadcast %0 : vector<8x1xi32> to vector<8x16xi32>
    %3 = arith.cmpi eq, %1, %2 : vector<8x16xi32>
    %4 = arith.extui %3 : vector<8x16xi1> to vector<8x16xi32>
    %5 = arith.sitofp %4 : vector<8x16xi32> to vector<8x16xf32>
    %c0_1 = arith.constant 0 : index
    %c0_2 = arith.constant 0 : index
    %6 = vector.load %arg2[%c0_1, %c0_2] : memref<16x64xf32, #tpu.memory_space<vmem>>, vector<16x64xf32>
    %cst = arith.constant dense<0.000000e+00> : vector<8x64xf32>
    %7 = tpu.matmul %5, %6, %cst {dimension_numbers = #tpu.dot_dimension_numbers<[1], [0], [0], [1], [0, 0, 1, 1], [], []>} : vector<8x16xf32>, vector<16x64xf32>, vector<8x64xf32> -> vector<8x64xf32>
    %cst_3 = arith.constant 0.000000e+00 : f32
    %8 = vector.broadcast %cst_3 : f32 to vector<8x64xf32>
    %9 = arith.maximumf %7, %8 : vector<8x64xf32>
    %c0_4 = arith.constant 0 : index
    %c0_5 = arith.constant 0 : index
    %10 = vector.load %arg3[%c0_4, %c0_5] : memref<64x64xf32, #tpu.memory_space<vmem>>, vector<64x64xf32>
    %cst_6 = arith.constant dense<0.000000e+00> : vector<8x64xf32>
    %11 = tpu.matmul %9, %10, %cst_6 {dimension_numbers = #tpu.dot_dimension_numbers<[1], [0], [0], [1], [0, 0, 1, 1], [], []>} : vector<8x64xf32>, vector<64x64xf32>, vector<8x64xf32> -> vector<8x64xf32>
    %c0_7 = arith.constant 0 : index
    %c0_8 = arith.constant 0 : index
    %12 = vector.load %arg4[%c0_7, %c0_8] : memref<1x64xf32, #tpu.memory_space<vmem>>, vector<1x64xf32>
    %13 = vector.broadcast %12 : vector<1x64xf32> to vector<8x64xf32>
    %14 = arith.addf %11, %13 : vector<8x64xf32>
    %cst_9 = arith.constant 0.000000e+00 : f32
    %15 = vector.broadcast %cst_9 : f32 to vector<8x64xf32>
    %16 = arith.maximumf %14, %15 : vector<8x64xf32>
    %c0_10 = arith.constant 0 : index
    %c0_11 = arith.constant 0 : index
    %17 = vector.load %arg5[%c0_10, %c0_11] : memref<64x128xf32, #tpu.memory_space<vmem>>, vector<64x128xf32>
    %cst_12 = arith.constant dense<0.000000e+00> : vector<8x128xf32>
    %18 = tpu.matmul %16, %17, %cst_12 {dimension_numbers = #tpu.dot_dimension_numbers<[1], [0], [0], [1], [0, 0, 1, 1], [], []>} : vector<8x64xf32>, vector<64x128xf32>, vector<8x128xf32> -> vector<8x128xf32>
    %c0_13 = arith.constant 0 : index
    %c0_14 = arith.constant 0 : index
    %19 = vector.load %arg6[%c0_13, %c0_14] : memref<1x128xf32, #tpu.memory_space<vmem>>, vector<1x128xf32>
    %20 = vector.broadcast %19 : vector<1x128xf32> to vector<8x128xf32>
    %21 = arith.addf %18, %20 : vector<8x128xf32>
    %c0_15 = arith.constant 0 : index
    %c0_16 = arith.constant 0 : index
    %22 = vector.load %arg7[%c0_15, %c0_16] : memref<8x128xf32, #tpu.memory_space<vmem>>, vector<8x128xf32>
    tpu.vector_store %arg7[%c0_15, %c0_16], %21 {strides = array<i32>} : memref<8x128xf32, #tpu.memory_space<vmem>>, vector<8x128xf32>,
    return
  }
  func.func @transform_0(%arg0: i32) -> (i32, i32) {
    %c0_i32 = arith.constant 0 : i32
    %c0_i32_0 = arith.constant 0 : i32
    return %arg0, %c0_i32 : i32, i32
  }
  func.func @transform_1(%arg0: i32) -> (i32, i32) {
    %c0_i32 = arith.constant 0 : i32
    %c0_i32_0 = arith.constant 0 : i32
    %c0_i32_1 = arith.constant 0 : i32
    return %c0_i32, %c0_i32_0 : i32, i32
  }
  func.func @transform_2(%arg0: i32) -> (i32, i32) {
    %c0_i32 = arith.constant 0 : i32
    %c0_i32_0 = arith.constant 0 : i32
    %c0_i32_1 = arith.constant 0 : i32
    return %c0_i32, %c0_i32_0 : i32, i32
  }
  func.func @transform_3(%arg0: i32) -> (i32, i32) {
    %c0_i32 = arith.constant 0 : i32
    %c0_i32_0 = arith.constant 0 : i32
    %c0_i32_1 = arith.constant 0 : i32
    return %c0_i32, %c0_i32_0 : i32, i32
  }
  func.func @transform_4(%arg0: i32) -> (i32, i32) {
    %c0_i32 = arith.constant 0 : i32
    %c0_i32_0 = arith.constant 0 : i32
    %c0_i32_1 = arith.constant 0 : i32
    return %c0_i32, %c0_i32_0 : i32, i32
  }
  func.func @transform_5(%arg0: i32) -> (i32, i32) {
    %c0_i32 = arith.constant 0 : i32
    %c0_i32_0 = arith.constant 0 : i32
    %c0_i32_1 = arith.constant 0 : i32
    return %c0_i32, %c0_i32_0 : i32, i32
  }
  func.func @transform_6(%arg0: i32) -> (i32, i32) {
    %c0_i32 = arith.constant 0 : i32
    %c0_i32_0 = arith.constant 0 : i32
    return %arg0, %c0_i32 : i32, i32
  }
}

</mosaic_0001>

<bundles_post_ra>
// kernel: _policy_pallas.1
= control target key start
LH: loop header
LB: loop body
LE: loop exit
PB: predicated region body
PF: predicated region fallthrough
CT: control target
= control target key end

     0   :  { %11 = vsyncpa [#allocation3], 0  ;;  %s606_s0 = inlined_call_operand.vmem [shape: s32[8,1], index: 0, kind: input, shape index: {}]   ;;  %s607_s1 = inlined_call_operand.hbm [shape: f32[16,64], index: 1, kind: input, shape index: {}]   ;;  %s608_s2 = inlined_call_operand.hbm [shape: f32[64,64], index: 2, kind: input, shape index: {}]   ;;  %s609_s3 = inlined_call_operand.vmem [shape: f32[1,64], index: 3, kind: input, shape index: {}]   ;;  %s610_s4 = inlined_call_operand.hbm [shape: f32[64,128], index: 4, kind: input, shape index: {}]   ;;  %s611_s5 = inlined_call_operand.vmem [shape: f32[1,128], index: 5, kind: input, shape index: {}]   ;;  %s612_s6 = inlined_call_operand.hbm [shape: f32[8,128], index: 6, kind: output, shape index: {}]  }
   0x1   :  { %12 = vsyncpa [#allocation6], 0 }
   0x2   :  { %13 = vsyncpa [#allocation4], 0  ;;  %s514_s21 = smov [#allocation5]   ;;  %s515_s23 = smov [#allocation2]  }
   0x3   :  { %s33_s22 = sshll.u32 %s514_s21, 4  ;;  %s21_s24 = sshll.u32 %s515_s23, 4  ;;  %s34_s22 = int_to_ptr.vmem [resolvable:$true] %s33_s22  ;;  %s22_s24 = int_to_ptr.vmem [resolvable:$true] %s21_s24 }
   0x4   :  { %s436_s25 = scalar_lea.vmem %s34_s22, 1024  ;;  %p441_p1 = scmp.lt.s32.totalorder %s34_s22, %s34_s22 }
   0x5   :  { %p437_p0 = scmp.ne.s32.totalorder %s34_s22, %s436_s25  ;;  %p442_p2 = scmp.lt.s32.totalorder %s436_s25, %s436_s25 }
   0x7   :  { %p443_p3 = por %p442_p2, %p441_p1 }
   0x9   :  { %p444_p4 = pnand %p443_p3, %p437_p0 }
   0xb   :  { %447 = shalt.err (!%p444_p4)
}
   0xc   :  { %s516_s26 = smov 128   ;;  %s517_s27 = smov 8  }
   0xd   :  { %39 = dma.hbm_to_vmem [thread:$0]  %s608_s2, 1024, %s34_s22, [#allocation6], %s516_s26, %s516_s26, %s517_s27  }
   0xe   :  { %s456_s30 = scalar_lea.vmem %s22_s24, 256  ;;  %p461_p6 = scmp.lt.s32.totalorder %s22_s24, %s22_s24 }
   0xf   :  { %p457_p5 = scmp.ne.s32.totalorder %s22_s24, %s456_s30  ;;  %p462_p7 = scmp.lt.s32.totalorder %s456_s30, %s456_s30 }
  0x11   :  { %p463_p8 = por %p462_p7, %p461_p6 }
  0x13   :  { %p464_p9 = pnand %p463_p8, %p457_p5 }
  0x15   :  { %467 = shalt.err (!%p464_p9)
}
  0x16   :  { %27 = dma.hbm_to_vmem [thread:$0]  %s607_s1, 256, %s22_s24, [#allocation3], %s516_s26, %s516_s26, %s517_s27  }
  0x17   :  { %s518_s9 = smov [#allocation7]  }
  0x18   :  { %s47_s10 = sshll.u32 %s518_s9, 4  ;;  %s48_s10 = int_to_ptr.vmem [resolvable:$true] %s47_s10 }
  0x19   :  { %s476_s11 = scalar_lea.vmem %s48_s10, 1024  ;;  %p481_p11 = scmp.lt.s32.totalorder %s48_s10, %s48_s10 }
  0x1a   :  { %p477_p10 = scmp.ne.s32.totalorder %s48_s10, %s476_s11  ;;  %p482_p12 = scmp.lt.s32.totalorder %s476_s11, %s476_s11 }
  0x1c   :  { %p483_p13 = por %p482_p12, %p481_p11 }
  0x1e   :  { %p484_p0 = pnand %p483_p13, %p477_p10 }
  0x20   :  { %487 = shalt.err (!%p484_p0)
}
  0x21   :  { %53 = dma.hbm_to_vmem [thread:$0]  %s610_s4, 1024, %s48_s10, [#allocation6], %s516_s26, %s516_s26, %s517_s27  }
  0x22   :  { %508 = dma.done.wait [#allocation3], 256  }
  0x23   :  { %509 = vsyncadd [#allocation3], 4294967040 }
  0x24   :  { %510 = dma.done.wait [#allocation6], 2048  }
  0x25   :  { %511 = vsyncadd [#allocation6], 4294965248  ;;  %v519_v0 = vmov 0   ;;  %v520_v1 = vmov 0.0   ;;  %vm521_vm0 = vmmov 0   ;;  %v65_v2 = vld [vmem:[%s606_s0] sm:$0xff]  ;;  %v66_v11 = vlaneseq }
  0x26   :  { %427 = vset.pattern.permute.xlu0 %v519_v0  ;;  %373 = vmatprep.subr.mxu0 %v520_v1  ;;  %v75_v3 = vld [vmem:[#allocation2 + $0x8] sm:$0xff]  ;;  %v74_v4 = vld [vmem:[#allocation2] sm:$0xff]  ;;  %v156_v7 = vld [vmem:[#allocation5 + $0x28] sm:$0xff]  ;;  %vm76_vm1 = vcmask 130048   ;;  %vm166_vm3 = vcmask 523264   ;;  %s522_s16 = smov [#allocation8]  }
  0x27   :  { %380 = vmatprep.subr.mxu1 %v520_v1  ;;  %377 = vmatprep.mubr.msk.f32.mxu0 %vm521_vm0, %v520_v1  ;;  %v158_v5 = vld [vmem:[#allocation5 + $0x38] sm:$0xff]  ;;  %v157_v6 = vld [vmem:[#allocation5 + $0x30] sm:$0xff]  ;;  %v155_v8 = vld [vmem:[#allocation5 + $0x20] sm:$0xff]  ;;  %v67_v12 = vand.u32 127, %v66_v11  ;;  %s336_s17 = sshll.u32 %s522_s16, 4  ;;  %s337_s17 = int_to_ptr.vmem [resolvable:$true] %s336_s17 }
  0x28   :  { %396 = vmatprep.mubr.msk.f32.mxu1 %vm521_vm0, %v520_v1  ;;  %69 = vperm.xlu0 %427, %v65_v2   ;;  %v154_v9 = vld [vmem:[#allocation5 + $0x18] sm:$0xff]  ;;  %v153_v10 = vld [vmem:[#allocation5 + $0x10] sm:$0xff]  ;;  %v152_v15 = vld [vmem:[#allocation5 + $0x8] sm:$0xff]  ;;  %s488_s18 = scalar_lea.vmem %s337_s17, 128  ;;  %p493_p2 = scmp.lt.s32.totalorder %s337_s17, %s337_s17 }
  0x29   :  { %374 = vmatpush3.msra.mxu0 %v75_v3  ;;  %381 = vmatpush3.msra.mxu1 %v158_v5  ;;  %v151_v16 = vld [vmem:[#allocation5] sm:$0xff]  ;;  %v248_v17 = vld [vmem:[#allocation7 + $0x38] sm:$0xff]  ;;  %v247_v18 = vld [vmem:[#allocation7 + $0x30] sm:$0xff]  ;;  %p489_p1 = scmp.ne.s32.totalorder %s337_s17, %s488_s18  ;;  %p494_p3 = scmp.lt.s32.totalorder %s488_s18, %s488_s18 }
  0x2a   :  { %375 = vmatprep.subr.mxu0 %v520_v1  ;;  %382 = vmatprep.subr.mxu1 %v520_v1  ;;  %v246_v19 = vld [vmem:[#allocation7 + $0x28] sm:$0xff]  ;;  %v245_v20 = vld [vmem:[#allocation7 + $0x20] sm:$0xff]  ;;  %v244_v21 = vld [vmem:[#allocation7 + $0x18] sm:$0xff] }
  0x2b   :  { %376 = vmatpush3.msra.mxu0 %v74_v4  ;;  %383 = vmatpush3.msra.mxu1 %v157_v6  ;;  %v243_v25 = vld [vmem:[#allocation7 + $0x10] sm:$0xff]  ;;  %v242_v26 = vld [vmem:[#allocation7 + $0x8] sm:$0xff]  ;;  %v241_v27 = vld [vmem:[#allocation7] sm:$0xff]  ;;  %p495_p4 = por %p494_p3, %p493_p2 }
  0x2c   :  { %399 = vmatprep.subr.mxu0 %v520_v1  ;;  %384 = vmatprep.subr.mxu1 %v520_v1  ;;  %v348_v28 = vld [vmem:[%s609_s3] ss:$0 sm:$0xff] }
  0x2d   :  { %385 = vmatpush3.msra.mxu1 %v156_v7  ;;  %v350_v33 = vld [vmem:[%s611_s5] ss:$0 sm:$0xff]  ;;  %p496_p5 = pnand %p495_p4, %p489_p1 }
  0x2e   :  { %386 = vmatprep.subr.mxu1 %v520_v1 }
  0x2f   :  { %387 = vmatpush3.msra.mxu1 %v155_v8 }
  0x30   :  { %388 = vmatprep.subr.mxu1 %v520_v1 }
  0x31   :  { %389 = vmatpush3.msra.mxu1 %v154_v9 }
  0x32   :  { %390 = vmatprep.subr.mxu1 %v520_v1 }
  0x33   :  { %391 = vmatpush3.msra.mxu1 %v153_v10 }
  0x34   :  { %392 = vmatprep.subr.mxu1 %v520_v1 }
  0x35   :  { %393 = vmatpush3.msra.mxu1 %v152_v15 }
  0x36   :  { %394 = vmatprep.subr.mxu1 %v520_v1 }
  0x37   :  { %395 = vmatpush3.msra.mxu1 %v151_v16 }
  0xa3   :  { %v70_v13 = vpop.permute.xlu0 %69 }
  0xa4   :  { %vm71_vm2 = vcmp.eq.s32.totalorder %v67_v12, %v70_v13 }
  0xa5   :  { %v346_v14 = vsel %vm71_vm2, 1.0, %v520_v1 }
  0xa6   :  { %378 = vmatmul.mubr.msk.f32.vlgmr.msra.gmra.mxu0 %vm76_vm1, %v346_v14 }
  0xa7   :  { %415 = vmatprep.mubr.msk.f32.mxu0 %vm521_vm0, %v520_v1  ;;  %400 = vmatpush3.msra.mxu0 %v248_v17 }
  0xa8   :  { %401 = vmatprep.subr.mxu0 %v520_v1 }
  0xa9   :  { %402 = vmatpush3.msra.mxu0 %v247_v18 }
  0xaa   :  { %403 = vmatprep.subr.mxu0 %v520_v1 }
  0xab   :  { %404 = vmatpush3.msra.mxu0 %v246_v19 }
  0xac   :  { %405 = vmatprep.subr.mxu0 %v520_v1 }
  0xad   :  { %406 = vmatpush3.msra.mxu0 %v245_v20 }
  0xae   :  { %407 = vmatprep.subr.mxu0 %v520_v1 }
  0xaf   :  { %408 = vmatpush3.msra.mxu0 %v244_v21 }
  0xb0   :  { %409 = vmatprep.subr.mxu0 %v520_v1 }
  0xb1   :  { %410 = vmatpush3.msra.mxu0 %v243_v25 }
  0xb2   :  { %411 = vmatprep.subr.mxu0 %v520_v1 }
  0xb3   :  { %412 = vmatpush3.msra.mxu0 %v242_v26 }
  0xb4   :  { %413 = vmatprep.subr.mxu0 %v520_v1 }
  0xb5   :  { %414 = vmatpush3.msra.mxu0 %v241_v27 }
 0x166   :  { %v146_v22 = vpop.f32.mrf.mxu0 }
 0x167   :  { %v150_v23 = vmax.f32 %v146_v22, 0.0 }
 0x168   :  { %v379_v24 = vpop.f32.mrf.mxu0 }
 0x169   :  { %397 = vmatmul.mubr.msk.f32.vlgmr.msra.gmra.mxu1 %vm166_vm3, %v150_v23 }
 0x229   :  { %v236_v29 = vpop.f32.mrf.mxu1 }
 0x22a   :  { %v237_v30 = vadd.f32 %v348_v28, %v236_v29 }
 0x22b   :  { %v398_v31 = vpop.f32.mrf.mxu1 }
 0x22c   :  { %v240_v32 = vmax.f32 %v237_v30, 0.0 }
 0x22e   :  { %416 = vmatmul.mubr.msk.f32.vlgmr.msra.gmra.mxu0 %vm166_vm3, %v240_v32 }
 0x2ee   :  { %v325_v34 = vpop.f32.mrf.mxu0 }
 0x2ef   :  { %v326_v35 = vadd.f32 %v350_v33, %v325_v34 }
 0x2f0   :  { %v417_v36 = vpop.f32.mrf.mxu0 }
 0x2f1   :  { %329 = vst [vmem:[#allocation8] sm:$0xff] %v326_v35 }
 0x2f2   :  { %499 = shalt.err (!%p496_p5)
}
 0x2f3   :  { %339 = dma.vmem_to_hbm [thread:$0]  %s337_s17, 128, %s612_s6, [#allocation4]  }
 0x2f4   :  { %512 = dma.done.wait [#allocation4], 128  }
 0x2f5   :  { %513 = vsyncadd [#allocation4], 4294967168 }
 0x2f6   :  { %343 = vsyncpa [#allocation3], 1 }
 0x2f7   :  { %344 = vsyncpa [#allocation6], 1 }
 0x2f8   :  { %345 = vsyncpa [#allocation4], 1 }

</bundles_post_ra>
